<compile_context>
chip_gen: v7x
topology: tpu7x:2x2x1
jax: 0.10.0
libtpu: 0.0.40
codegen_flags: <defaults>
</compile_context>

<pallas_src>
import functools

import numpy as np
import jax
import jax.numpy as jnp
from jax.experimental import pallas as pl
from jax.experimental.pallas import tpu as pltpu


# ---------------------------------------------------------------------------
# Pallas kernel: fused  Y = relu_opt( W @ X + bias )   (one batch/lane tile)
# ---------------------------------------------------------------------------
def _fused_matmul_kernel(w_ref, b_ref, x_ref, o_ref, *, act):
    # x_ref: (1, Cin, t_hw) f32 -> cast to bf16 on the VPU (input read once).
    x = x_ref[0].astype(jnp.bfloat16)
    # MXU matmul, f32 accumulation: (Np, Cin) @ (Cin, t_hw) -> (Np, t_hw).
    acc = jnp.dot(w_ref[...], x, preferred_element_type=jnp.float32)
    y = acc + b_ref[...]                      # bias column (Np, 1), f32
    if act:
        y = jnp.maximum(y, 0.0)
    o_ref[0] = y.astype(o_ref.dtype)          # bf16 store, lane-dense (t_hw%128==0)


def _pick_lane_tile(hw):
    """Lane (H*W) tile: big & lane-dense when possible, full extent otherwise."""
    if hw % 128 != 0:
        return hw                             # full-extent block (ragged spatial)
    for cand in (1024, 512, 256, 128):        # fewer steps / unmasked vst
        if hw % cand == 0:
            return cand
    return hw


def fused_matmul_bias_act(w_t, bias_col, x3, *, act, out_dtype=jnp.bfloat16):
    """Y[n] = relu_opt(w_t @ x3[n] + bias_col).

    w_t: (Np, Cin) bf16, bias_col: (Np, 1) f32, x3: (N, Cin, HW) f32.
    Returns (N, Np, HW) in `out_dtype` (bf16 by default per perf review).
    Cin is a single full-extent contraction block: no reduction grid axis.
    """
    np_rows, cin = w_t.shape
    nb, cin2, hw = x3.shape
    assert cin == cin2 and bias_col.shape == (np_rows, 1)

    t_hw = _pick_lane_tile(hw)
    grid = (nb, hw // t_hw)                   # batch axis parallel across TCs (v7x)

    return pl.pallas_call(
        functools.partial(_fused_matmul_kernel, act=act),
        out_shape=jax.ShapeDtypeStruct((nb, np_rows, hw), out_dtype),
        grid_spec=pltpu.PrefetchScalarGridSpec(
            num_scalar_prefetch=0,
            grid=grid,
            in_specs=[
                pl.BlockSpec((np_rows, cin), lambda n, j: (0, 0)),   # folded weight
                pl.BlockSpec((np_rows, 1), lambda n, j: (0, 0)),     # folded bias
                pl.BlockSpec((1, cin, t_hw), lambda n, j: (n, 0, j)),  # NCHW input tile
            ],
            out_specs=pl.BlockSpec((1, np_rows, t_hw), lambda n, j: (n, 0, j)),
        ),
        compiler_params=pltpu.CompilerParams(
            dimension_semantics=("parallel", "parallel")),
    )(w_t, bias_col, x3)


# ---------------------------------------------------------------------------
# Parameter construction (deterministic) with BN folding, done ONCE at init
# ---------------------------------------------------------------------------
def init_conv_transpose_bn_act_block(key, inplanes, planes, kernel_size, stride,
                                     groups=1, has_bn=True, has_act=True):
    # TODO(synk): groups > 1 (grouped transposed conv) not implemented; PFANMatting uses groups=1.
    assert groups == 1
    # TODO(synk): stride != kernel_size would create overlapping (summed) taps; PFANMatting
    #             only instantiates this block with kernel_size == stride == 2.
    assert stride == kernel_size
    k = kernel_size
    k_w, k_g, k_b, k_m, k_v, k_cb = jax.random.split(key, 6)

    # PyTorch ConvTranspose2d weight layout: (Cin, Cout, kh, kw).
    w = jax.random.normal(k_w, (inplanes, planes, k, k), jnp.float32) / np.sqrt(inplanes)

    if has_bn:
        gamma = 1.0 + 0.1 * jax.random.normal(k_g, (planes,), jnp.float32)
        beta = 0.1 * jax.random.normal(k_b, (planes,), jnp.float32)
        rmean = 0.1 * jax.random.normal(k_m, (planes,), jnp.float32)
        rvar = 1.0 + 0.1 * jax.random.uniform(k_v, (planes,), jnp.float32)
        # TODO(synk): eval-mode BatchNorm folded with synthetic running statistics;
        #             train-mode batch statistics are not reproduced.
        scale = gamma / jnp.sqrt(rvar + 1e-5)
        bias = beta - rmean * scale
    else:
        scale = jnp.ones((planes,), jnp.float32)
        bias = 0.1 * jax.random.normal(k_cb, (planes,), jnp.float32)  # conv bias

    # Fold BN scale into the weight, reorder rows to (kh, kw, cout), pre-cast bf16.
    # No 128-padding needed: the row axis is a full-extent (sublane) block dim.
    w_t = jnp.transpose(w * scale[None, :, None, None], (2, 3, 1, 0))
    w_t = w_t.reshape(k * k * planes, inplanes).astype(jnp.bfloat16)
    bias_col = jnp.tile(bias, k * k).reshape(k * k * planes, 1)       # f32

    static = dict(kernel_size=k, stride=stride, inplanes=inplanes, planes=planes,
                  has_act=has_act)
    arrays = dict(w_t=w_t, bias_col=bias_col)
    ref_arrays = dict(w=w, scale=scale, bias=bias)   # for the f32 reference check
    return static, arrays, ref_arrays


# ---------------------------------------------------------------------------
# Block forward (NCHW in / NCHW out, like the PyTorch module)
# ---------------------------------------------------------------------------
def conv_transpose_bn_act_forward(x_nchw, w_t, bias_col, *, kernel_size, planes,
                                  has_act):
    """ConvTranspose2d(k, stride=k) + BatchNorm2d(eval, folded) + ReLU, NCHW->NCHW."""
    k = kernel_size
    nb, ci, h, w = x_nchw.shape
    x3 = x_nchw.reshape(nb, ci, h * w)        # free reshape: input stays in NCHW layout
    y = fused_matmul_bias_act(w_t, bias_col, x3, act=has_act)   # (nb, k*k*planes, h*w) bf16

    # Single combined depth-to-space + channels-first permutation (one XLA copy
    # of the largest tensor, in bf16). Taps never overlap (stride == kernel).
    y = y.reshape(nb, k, k, planes, h, w)                 # (n, kh, kw, co, h, w)
    y = jnp.transpose(y, (0, 3, 4, 1, 5, 2))              # (n, co, h, kh, w, kw)
    return y.reshape(nb, planes, h * k, w * k)            # NCHW, bf16


# ---------------------------------------------------------------------------
# Pure-JAX f32 reference (direct transposed-conv definition)
# ---------------------------------------------------------------------------
def reference_forward(x_nchw, w, scale, bias, *, kernel_size, has_act):
    k = kernel_size
    nb, ci, h, wd = x_nchw.shape
    co = w.shape[1]
    # out[n, o, h*k+kh, w*k+kw] = sum_c x[n,c,h,w] * w[c,o,kh,kw]
    t = jnp.einsum('nchw,cokl->nohkwl', x_nchw.astype(jnp.float32), w)
    y = t.reshape(nb, co, h * k, wd * k)
    y = y * scale[None, :, None, None] + bias[None, :, None, None]
    if has_act:
        y = jnp.maximum(y, 0.0)
    return y


# ---------------------------------------------------------------------------
if __name__ == "__main__":
    key = jax.random.PRNGKey(0)
    k_x, k_p = jax.random.split(key)

    # PFANMatting instantiates this block as ConvTransposeBnActBlock(32, 32, 2, 2).
    inplanes, planes, kernel_size, stride = 32, 32, 2, 2
    batch, height, width = 2, 16, 16

    x = jax.random.normal(k_x, (batch, inplanes, height, width), jnp.float32)  # NCHW
    static, arrays, ref_arrays = init_conv_transpose_bn_act_block(
        k_p, inplanes, planes, kernel_size, stride,
        groups=1, has_bn=True, has_act=True)

    fwd = jax.jit(functools.partial(
        conv_transpose_bn_act_forward,
        kernel_size=static['kernel_size'], planes=static['planes'],
        has_act=static['has_act']))

    out = fwd(x, arrays['w_t'], arrays['bias_col'])
    out = jax.block_until_ready(out)

    assert out.shape == (batch, planes, height * stride, width * stride)
    assert out.dtype == jnp.bfloat16
    out_f32 = out.astype(jnp.float32)
    assert bool(jnp.all(jnp.isfinite(out_f32)))

    # Numerical check against the f32 reference (relaxed tol: bf16 MXU + bf16 out).
    ref = reference_forward(x, ref_arrays['w'], ref_arrays['scale'], ref_arrays['bias'],
                            kernel_size=kernel_size, has_act=True)
    max_err = float(jnp.max(jnp.abs(out_f32 - ref)))
    tol = 0.05 * float(jnp.max(jnp.abs(ref))) + 1e-3
    assert max_err < tol, (max_err, tol)

    print("KERNEL_OK")
</pallas_src>

<mosaic_0001>
module attributes {stable_mosaic.version = 11 : i64} {
  func.func @_fused_matmul_kernel(%arg0: i32, %arg1: i32, %arg2: memref<128x32xbf16, #tpu.memory_space<vmem>>, %arg3: memref<128x1xf32, #tpu.memory_space<vmem>>, %arg4: memref<1x32x256xf32, #tpu.memory_space<vmem>>, %arg5: memref<1x128x256xbf16, #tpu.memory_space<vmem>>) attributes {dimension_semantics = [#tpu.dimension_semantics<parallel>, #tpu.dimension_semantics<parallel>], iteration_bounds = array<i64: 2, 1>, scalar_prefetch = 0 : i64, scratch_operands = 0 : i64, tpu.core_type = #tpu.core_type<tc>, window_params = [{pipeline_mode = #tpu.pipeline_mode<synchronous>, transform_indices = @transform_0, window_bounds = array<i64: 128, 32>}, {pipeline_mode = #tpu.pipeline_mode<synchronous>, transform_indices = @transform_1, window_bounds = array<i64: 128, 1>}, {transform_indices = @transform_2, window_bounds = array<i64: 1, 32, 256>}, {transform_indices = @transform_3, window_bounds = array<i64: 1, 128, 256>}]} {
    %c0 = arith.constant 0 : index
    %c0_0 = arith.constant 0 : index
    %c0_1 = arith.constant 0 : index
    %0 = vector.load %arg4[%c0, %c0_0, %c0_1] : memref<1x32x256xf32, #tpu.memory_space<vmem>>, vector<1x32x256xf32>
    %1 = vector.shape_cast %0 : vector<1x32x256xf32> to vector<32x256xf32>
    %2 = arith.truncf %1 : vector<32x256xf32> to vector<32x256xbf16>
    %c0_2 = arith.constant 0 : index
    %c0_3 = arith.constant 0 : index
    %3 = vector.load %arg2[%c0_2, %c0_3] : memref<128x32xbf16, #tpu.memory_space<vmem>>, vector<128x32xbf16>
    %cst = arith.constant dense<0.000000e+00> : vector<128x256xf32>
    %4 = tpu.matmul %3, %2, %cst {dimension_numbers = #tpu.dot_dimension_numbers<[1], [0], [0], [1], [0, 0, 1, 1], [], []>} : vector<128x32xbf16>, vector<32x256xbf16>, vector<128x256xf32> -> vector<128x256xf32>
    %c0_4 = arith.constant 0 : index
    %c0_5 = arith.constant 0 : index
    %5 = vector.load %arg3[%c0_4, %c0_5] : memref<128x1xf32, #tpu.memory_space<vmem>>, vector<128x1xf32>
    %6 = vector.broadcast %5 : vector<128x1xf32> to vector<128x256xf32>
    %7 = arith.addf %4, %6 : vector<128x256xf32>
    %cst_6 = arith.constant 0.000000e+00 : f32
    %8 = vector.broadcast %cst_6 : f32 to vector<128x256xf32>
    %9 = arith.maximumf %7, %8 : vector<128x256xf32>
    %10 = arith.truncf %9 : vector<128x256xf32> to vector<128x256xbf16>
    %c0_7 = arith.constant 0 : index
    %c0_8 = arith.constant 0 : index
    %c0_9 = arith.constant 0 : index
    %11 = vector.load %arg5[%c0_7, %c0_8, %c0_9] : memref<1x128x256xbf16, #tpu.memory_space<vmem>>, vector<1x128x256xbf16>
    %12 = vector.shape_cast %11 : vector<1x128x256xbf16> to vector<128x256xbf16>
    %13 = vector.shape_cast %10 : vector<128x256xbf16> to vector<1x128x256xbf16>
    tpu.vector_store %arg5[%c0_7, %c0_8, %c0_9], %13 {strides = array<i32>} : memref<1x128x256xbf16, #tpu.memory_space<vmem>>, vector<1x128x256xbf16>,
    return
  }
  func.func @transform_0(%arg0: i32, %arg1: i32) -> (i32, i32) {
    %c0_i32 = arith.constant 0 : i32
    %c0_i32_0 = arith.constant 0 : i32
    %c0_i32_1 = arith.constant 0 : i32
    return %c0_i32, %c0_i32_0 : i32, i32
  }
  func.func @transform_1(%arg0: i32, %arg1: i32) -> (i32, i32) {
    %c0_i32 = arith.constant 0 : i32
    %c0_i32_0 = arith.constant 0 : i32
    %c0_i32_1 = arith.constant 0 : i32
    return %c0_i32, %c0_i32_0 : i32, i32
  }
  func.func @transform_2(%arg0: i32, %arg1: i32) -> (i32, i32, i32) {
    %c0_i32 = arith.constant 0 : i32
    %c0_i32_0 = arith.constant 0 : i32
    return %arg0, %c0_i32, %arg1 : i32, i32, i32
  }
  func.func @transform_3(%arg0: i32, %arg1: i32) -> (i32, i32, i32) {
    %c0_i32 = arith.constant 0 : i32
    %c0_i32_0 = arith.constant 0 : i32
    return %arg0, %c0_i32, %arg1 : i32, i32, i32
  }
}

</mosaic_0001>

<bundles_post_ra>
// kernel: conv_transpose_bn_act_forward.1
= control target key start
LH: loop header
LB: loop body
LE: loop exit
PB: predicated region body
PF: predicated region fallthrough
CT: control target
= control target key end

     0   :  { %s889_s12 = smov 0   ;;  %s891_s13 = smov 0   ;;  %s1050_s0 = inlined_call_operand.vmem [shape: bf16[128,32], index: 0, kind: input, shape index: {}]   ;;  %s1051_s1 = inlined_call_operand.vmem [shape: f32[128,1], index: 1, kind: input, shape index: {}]   ;;  %s1052_s2 = inlined_call_operand.vmem [shape: f32[2,32,256], index: 2, kind: input, shape index: {}]   ;;  %s1053_s3 = inlined_call_operand.vmem [shape: bf16[2,128,256], index: 3, kind: output, shape index: {}]  }
   0x1   :  { %s893_s14 = smov 0  }
   0x2 LB: > { %s25_s15 = sadd.s32 1, %s862_s13  ;;  %p748_p0 = scmp.ge.s32.totalorder %s866_s14, 1  ;;  %s866_s14 = sphi %s893_s14, %s13_s14   ;;  %s862_s13 = sphi %s891_s13, %s1055_s13   ;;  %s858_s12 = sphi %s889_s12, %s1054_s12  }
   0x3   : > { %p27_p1 = scmp.ge.s32.totalorder %s25_s15, 2  ;;  %p158_p2 = scmp.lt.s32.totalorder %s866_s14, 3 }
   0x5   : > { %s1057_s15 = smov (%p27_p1, %s25_s15), 0  ;;  %p159_p3 = pnand %p748_p0, %p158_p2 }
   0x6   : > { %p191_p4 = scmp.lt.s32.totalorder (!%p159_p3), %s858_s12, 1  ;;  %v868_v0 = vmov (!%p159_p3), 0   ;;  %v241_v13 = vld [vmem:[%s1051_s1 + $0x10] sm:$0xff] (!%p159_p3)  ;;  %v239_v14 = vld [vmem:[%s1051_s1] sm:$0xff] (!%p159_p3)  ;;  %v242_v17 = vld [vmem:[%s1051_s1 + $0x18] sm:$0xff] (!%p159_p3)  ;;  %vm375_vm0 = vcmask (!%p159_p3), 261120  }
   0x7   : > { %162 = sbr.rel (%p159_p3) target bundleno = 274 (0x112), region = 32  ;;  %432 = vmatprep.mubr.bf16.mxu0 (!%p159_p3), %v868_v0  ;;  %472 = vmatprep.mubr.bf16.mxu1 (!%p159_p3), %v868_v0  ;;  %v836_v15 = vld [vmem:[%s1050_s0] sm:$0xff] (!%p159_p3)   ;;  %v240_v18 = vld [vmem:[%s1051_s1 + $0x8] sm:$0xff] (!%p159_p3)  ;;  %v246_v23 = vld [vmem:[%s1051_s1 + $0x38] sm:$0xff] (!%p159_p3) }
   0x8   : > { %835 = vset.pattern.permute.xlu1 (!%p159_p3), %v868_v0  ;;  %834 = vset.pattern.permute.xlu0 (!%p159_p3), %v868_v0  ;;  %v837_v16 = vld [vmem:[%s1050_s0 + $0x20] sm:$0xff] (!%p159_p3)   ;;  %v244_v19 = vld [vmem:[%s1051_s1 + $0x28] sm:$0xff] (!%p159_p3)  ;;  %v245_v24 = vld [vmem:[%s1051_s1 + $0x30] sm:$0xff] (!%p159_p3) }
   0x9   : > { %267 = vperm.xlu1 (!%p159_p3), %835, %v241_v13   ;;  %257 = vperm.xlu0 (!%p159_p3), %834, %v239_v14   ;;  %v243_v20 = vld [vmem:[%s1051_s1 + $0x20] sm:$0xff] (!%p159_p3)  ;;  %v838_v21 = vld [vmem:[%s1050_s0 + $0x8] sm:$0xff] (!%p159_p3)   ;;  %v840_v27 = vld [vmem:[%s1050_s0 + $0x10] sm:$0xff] (!%p159_p3)  }
   0xa   : > { %v839_v22 = vld [vmem:[%s1050_s0 + $0x28] sm:$0xff] (!%p159_p3)   ;;  %v247_v26 = vld [vmem:[%s1051_s1 + $0x40] sm:$0xff] (!%p159_p3)  ;;  %v841_v28 = vld [vmem:[%s1050_s0 + $0x30] sm:$0xff] (!%p159_p3)  }
   0xb   : > { %v248_v25 = vld [vmem:[%s1051_s1 + $0x48] sm:$0xff] (!%p159_p3)  ;;  %v250_v29 = vld [vmem:[%s1051_s1 + $0x58] sm:$0xff] (!%p159_p3)  ;;  %v249_v30 = vld [vmem:[%s1051_s1 + $0x50] sm:$0xff] (!%p159_p3) }
   0xc   : > { %v252_v31 = vld [vmem:[%s1051_s1 + $0x68] sm:$0xff] (!%p159_p3)  ;;  %v251_v32 = vld [vmem:[%s1051_s1 + $0x60] sm:$0xff] (!%p159_p3)  ;;  %v842_v33 = vld [vmem:[%s1050_s0 + $0x18] sm:$0xff] (!%p159_p3)  }
   0xd   : > { %272 = vperm.xlu1 (!%p159_p3), %835, %v242_v17   ;;  %262 = vperm.xlu0 (!%p159_p3), %834, %v240_v18   ;;  %v843_v34 = vld [vmem:[%s1050_s0 + $0x38] sm:$0xff] (!%p159_p3)   ;;  %v253_v36 = vld [vmem:[%s1051_s1 + $0x70] sm:$0xff] (!%p159_p3) }
   0xe   : > { %s1059_s12 = smov (!%p191_p4, %s858_s12), 1  ;;  %v254_v35 = vld [vmem:[%s1051_s1 + $0x78] sm:$0xff] }
   0xf   : > { %s787_s16 = sshll.u32 %s1059_s12, 6  ;;  %s788_s22 = sshll.u32 %s1059_s12, 7 }
  0x10   : > { %s198_s19 = scalar_lea.vmem %s1052_s2, %s787_s16  ;;  %s1015_s25 = scalar_lea.vmem %s1053_s3, %s788_s22 }
  0x11   : > { %v212_v1 = vld [vmem:[%s198_s19 + $0x8] sm:$0xff]  ;;  %v214_v2 = vld [vmem:[%s198_s19 + $0x18] sm:$0xff]  ;;  %v211_v3 = vld [vmem:[%s198_s19] sm:$0xff]  ;;  %282 = vperm.xlu1 %835, %v244_v19   ;;  %277 = vperm.xlu0 %834, %v243_v20  }
  0x12   : > { %v220_v4 = vpack.c.bf16 %v214_v2, %v212_v1  ;;  %v213_v5 = vld [vmem:[%s198_s19 + $0x10] sm:$0xff]  ;;  %v216_v6 = vld [vmem:[%s198_s19 + $0x28] sm:$0xff]  ;;  %v218_v7 = vld [vmem:[%s198_s19 + $0x38] sm:$0xff] }
  0x13   : > { %v219_v8 = vpack.c.bf16 %v213_v5, %v211_v3  ;;  %v222_v9 = vpack.c.bf16 %v218_v7, %v216_v6  ;;  %v215_v10 = vld [vmem:[%s198_s19 + $0x20] sm:$0xff]  ;;  %v217_v11 = vld [vmem:[%s198_s19 + $0x30] sm:$0xff] }
  0x14   : > { %400 = vmatprep.subr.bf16.mxu0 %v220_v4  ;;  %805 = vmatprep.subr.bf16.mxu1 %v220_v4  ;;  %v221_v12 = vpack.c.bf16 %v217_v11, %v215_v10 }
  0x15   : > { %401 = vmatpush1.bf16.msra.mxu0 %v219_v8  ;;  %807 = vmatpush1.bf16.msra.mxu1 %v219_v8 }
  0x16   : > { %402 = vmatprep.subr.bf16.mxu0 %v222_v9  ;;  %806 = vmatprep.subr.bf16.mxu1 %v222_v9 }
  0x17   : > { %292 = vperm.xlu1 %835, %v246_v23   ;;  %287 = vperm.xlu0 %834, %v245_v24  }
  0x19   : > { %403 = vmatpush1.bf16.msra.mxu0 %v221_v12  ;;  %808 = vmatpush1.bf16.msra.mxu1 %v221_v12 }
  0x1b   : > { %302 = vperm.xlu1 %835, %v248_v25   ;;  %297 = vperm.xlu0 %834, %v247_v26  }
  0x1c   : > { %761 = vmatmul.mubr.msk.bf16.vlgmr.msra.gmra.mrb[0].mxu0 %vm375_vm0, %v836_v15  ;;  %765 = vmatmul.mubr.msk.bf16.vlgmr.msra.gmra.mrb[0].mxu1 %vm375_vm0, %v837_v16 }
  0x1d   : > { %442 = vmatprep.mubr.bf16.mxu0 %v868_v0  ;;  %482 = vmatprep.mubr.bf16.mxu1 %v868_v0 }
  0x1f   : > { %312 = vperm.xlu1 %835, %v250_v29   ;;  %307 = vperm.xlu0 %834, %v249_v30  }
  0x23   : > { %322 = vperm.xlu1 %835, %v252_v31   ;;  %317 = vperm.xlu0 %834, %v251_v32  }
  0x24   : > { %762 = vmatmul.mubr.msk.bf16.gmra.mrb[4].mxu0 %vm375_vm0, %v838_v21  ;;  %766 = vmatmul.mubr.msk.bf16.gmra.mrb[4].mxu1 %vm375_vm0, %v839_v22 }
  0x25   : > { %452 = vmatprep.mubr.bf16.mxu0 %v868_v0  ;;  %492 = vmatprep.mubr.bf16.mxu1 %v868_v0 }
  0x27   : > { %332 = vperm.xlu1 %835, %v254_v35   ;;  %327 = vperm.xlu0 %834, %v253_v36  }
  0x2c   : > { %763 = vmatmul.mubr.msk.bf16.gmra.mrb[8].mxu0 %vm375_vm0, %v840_v27  ;;  %767 = vmatmul.mubr.msk.bf16.gmra.mrb[8].mxu1 %vm375_vm0, %v841_v28 }
  0x2d   : > { %462 = vmatprep.mubr.bf16.mxu0 %v868_v0  ;;  %502 = vmatprep.mubr.bf16.mxu1 %v868_v0 }
  0x34   : > { %764 = vmatmul.mubr.msk.bf16.gmra.mrb[12].mxu0 %vm375_vm0, %v842_v33  ;;  %768 = vmatmul.mubr.msk.bf16.gmra.mrb[12].mxu1 %vm375_vm0, %v843_v34 }
  0x88   : > { %v268_v37 = vpop.permute.xlu1 %267  ;;  %v258_v38 = vpop.permute.xlu0 %257 }
  0x8c   : > { %v273_v39 = vpop.permute.xlu1 %272  ;;  %v263_v40 = vpop.permute.xlu0 %262 }
  0x90   : > { %v1003_v41 = vpop.permute.xlu1 %282  ;;  %v1005_v42 = vpop.permute.xlu0 %277 }
  0x96   : > { %v1007_v43 = vpop.permute.xlu1 %292  ;;  %v1009_v44 = vpop.permute.xlu0 %287 }
  0x9a   : > { %v303_v45 = vpop.permute.xlu1 %302  ;;  %v298_v46 = vpop.permute.xlu0 %297 }
  0x9e   : > { %v313_v9 = vpop.permute.xlu1 %312  ;;  %v308_v10 = vpop.permute.xlu0 %307 }
  0xef   : > { %v434_v47 = vpop.f32.mrb[0].mxu0  ;;  %v474_v48 = vpop.f32.mrb[0].mxu1 }
  0xf0   : > { %v435_v49 = vadd.f32 %v434_v47, %v258_v38  ;;  %v475_v50 = vadd.f32 %v474_v48, %v298_v46  ;;  %v436_v51 = vpop.f32.mrb[1].mxu0  ;;  %v476_v52 = vpop.f32.mrb[1].mxu1 }
  0xf1   : > { %v437_v53 = vadd.f32 %v436_v51, %v258_v38  ;;  %v477_v54 = vadd.f32 %v476_v52, %v298_v46  ;;  %v438_v55 = vpop.f32.mrb[2].mxu0  ;;  %v478_v56 = vpop.f32.mrb[2].mxu1 }
  0xf2   : > { %v513_v57 = vmax.f32 %v435_v49, 0.0  ;;  %v529_v58 = vmax.f32 %v475_v50, 0.0  ;;  %v439_v59 = vadd.f32 %v438_v55, %v263_v40  ;;  %v479_v60 = vadd.f32 %v478_v56, %v303_v45  ;;  %v440_v61 = vpop.f32.mrb[3].mxu0  ;;  %v480_v62 = vpop.f32.mrb[3].mxu1 }
  0xf3   : > { %v514_v63 = vmax.f32 %v437_v53, 0.0  ;;  %v530_v0 = vmax.f32 %v477_v54, 0.0  ;;  %v441_v1 = vadd.f32 %v440_v61, %v263_v40  ;;  %v481_v2 = vadd.f32 %v480_v62, %v303_v45  ;;  %v323_v40 = vpop.permute.xlu1 %322  ;;  %v318_v45 = vpop.permute.xlu0 %317 }
  0xf4   : > { %v515_v3 = vmax.f32 %v439_v59, 0.0  ;;  %v531_v4 = vmax.f32 %v479_v60, 0.0 }
  0xf5   : > { %v789_v5 = vpack.c.bf16 %v514_v63, %v513_v57  ;;  %v797_v6 = vpack.c.bf16 %v530_v0, %v529_v58  ;;  %v516_v7 = vmax.f32 %v441_v1, 0.0  ;;  %v532_v8 = vmax.f32 %v481_v2, 0.0 }
  0xf7   : > { %641 = vst [vmem:[%s1015_s25] sm:$0xff] %v789_v5  ;;  %649 = vst [vmem:[%s1015_s25 + $0x40] sm:$0xff] %v797_v6  ;;  %v790_v11 = vpack.c.bf16 %v516_v7, %v515_v3  ;;  %v798_v12 = vpack.c.bf16 %v532_v8, %v531_v4  ;;  %v444_v13 = vpop.f32.mrb[4].mxu0  ;;  %v484_v14 = vpop.f32.mrb[4].mxu1 }
  0xf8   : > { %v445_v15 = vadd.f32 %v444_v13, %v268_v37  ;;  %v485_v16 = vadd.f32 %v484_v14, %v308_v10  ;;  %v446_v17 = vpop.f32.mrb[5].mxu0  ;;  %v486_v18 = vpop.f32.mrb[5].mxu1 }
  0xf9   : > { %642 = vst [vmem:[%s1015_s25 + $0x8] sm:$0xff] %v790_v11  ;;  %650 = vst [vmem:[%s1015_s25 + $0x48] sm:$0xff] %v798_v12  ;;  %v447_v19 = vadd.f32 %v446_v17, %v268_v37  ;;  %v487_v20 = vadd.f32 %v486_v18, %v308_v10  ;;  %v448_v21 = vpop.f32.mrb[6].mxu0  ;;  %v488_v22 = vpop.f32.mrb[6].mxu1 }
  0xfa   : > { %v517_v23 = vmax.f32 %v445_v15, 0.0  ;;  %v533_v24 = vmax.f32 %v485_v16, 0.0  ;;  %v449_v25 = vadd.f32 %v448_v21, %v273_v39  ;;  %v489_v26 = vadd.f32 %v488_v22, %v313_v9  ;;  %v450_v27 = vpop.f32.mrb[7].mxu0  ;;  %v490_v28 = vpop.f32.mrb[7].mxu1 }
  0xfb   : > { %v518_v29 = vmax.f32 %v447_v19, 0.0  ;;  %v534_v30 = vmax.f32 %v487_v20, 0.0  ;;  %v451_v31 = vadd.f32 %v450_v27, %v273_v39  ;;  %v491_v32 = vadd.f32 %v490_v28, %v313_v9  ;;  %v333_v8 = vpop.permute.xlu1 %332  ;;  %v328_v9 = vpop.permute.xlu0 %327 }
  0xfc   : > { %v519_v33 = vmax.f32 %v449_v25, 0.0  ;;  %v535_v34 = vmax.f32 %v489_v26, 0.0 }
  0xfd   : > { %v791_v35 = vpack.c.bf16 %v518_v29, %v517_v23  ;;  %v799_v36 = vpack.c.bf16 %v534_v30, %v533_v24  ;;  %v520_v37 = vmax.f32 %v451_v31, 0.0  ;;  %v536_v38 = vmax.f32 %v491_v32, 0.0 }
  0xff   : > { %643 = vst [vmem:[%s1015_s25 + $0x10] sm:$0xff] %v791_v35  ;;  %651 = vst [vmem:[%s1015_s25 + $0x50] sm:$0xff] %v799_v36  ;;  %v792_v46 = vpack.c.bf16 %v520_v37, %v519_v33  ;;  %v800_v47 = vpack.c.bf16 %v536_v38, %v535_v34  ;;  %v454_v48 = vpop.f32.mrb[8].mxu0  ;;  %v494_v49 = vpop.f32.mrb[8].mxu1 }
 0x100   : > { %v455_v50 = vadd.f32 %v454_v48, %v1005_v42  ;;  %v495_v39 = vadd.f32 %v494_v49, %v318_v45  ;;  %v456_v51 = vpop.f32.mrb[9].mxu0  ;;  %v496_v52 = vpop.f32.mrb[9].mxu1 }
 0x101   : > { %644 = vst [vmem:[%s1015_s25 + $0x18] sm:$0xff] %v792_v46  ;;  %652 = vst [vmem:[%s1015_s25 + $0x58] sm:$0xff] %v800_v47  ;;  %v457_v53 = vadd.f32 %v456_v51, %v1005_v42  ;;  %v497_v54 = vadd.f32 %v496_v52, %v318_v45  ;;  %v458_v55 = vpop.f32.mrb[10].mxu0  ;;  %v498_v56 = vpop.f32.mrb[10].mxu1 }
 0x102   : > { %v521_v57 = vmax.f32 %v455_v50, 0.0  ;;  %v537_v58 = vmax.f32 %v495_v39, 0.0  ;;  %v459_v59 = vadd.f32 %v458_v55, %v1003_v41  ;;  %v499_v60 = vadd.f32 %v498_v56, %v323_v40  ;;  %v460_v61 = vpop.f32.mrb[11].mxu0  ;;  %v500_v62 = vpop.f32.mrb[11].mxu1 }
 0x103   : > { %v522_v63 = vmax.f32 %v457_v53, 0.0  ;;  %v538_v0 = vmax.f32 %v497_v54, 0.0  ;;  %v461_v1 = vadd.f32 %v460_v61, %v1003_v41  ;;  %v501_v2 = vadd.f32 %v500_v62, %v323_v40 }
 0x104   : > { %v523_v3 = vmax.f32 %v459_v59, 0.0  ;;  %v539_v4 = vmax.f32 %v499_v60, 0.0 }
 0x105   : > { %v793_v42 = vpack.c.bf16 %v522_v63, %v521_v57  ;;  %v801_v5 = vpack.c.bf16 %v538_v0, %v537_v58  ;;  %v524_v6 = vmax.f32 %v461_v1, 0.0  ;;  %v540_v7 = vmax.f32 %v501_v2, 0.0 }
 0x107   : > { %645 = vst [vmem:[%s1015_s25 + $0x20] sm:$0xff] %v793_v42  ;;  %653 = vst [vmem:[%s1015_s25 + $0x60] sm:$0xff] %v801_v5  ;;  %v794_v10 = vpack.c.bf16 %v524_v6, %v523_v3  ;;  %v802_v11 = vpack.c.bf16 %v540_v7, %v539_v4  ;;  %v464_v12 = vpop.f32.mrb[12].mxu0  ;;  %v504_v13 = vpop.f32.mrb[12].mxu1 }
 0x108   : > { %v465_v14 = vadd.f32 %v464_v12, %v1009_v44  ;;  %v505_v41 = vadd.f32 %v504_v13, %v328_v9  ;;  %v466_v15 = vpop.f32.mrb[13].mxu0  ;;  %v506_v16 = vpop.f32.mrb[13].mxu1 }
 0x109   : > { %646 = vst [vmem:[%s1015_s25 + $0x28] sm:$0xff] %v794_v10  ;;  %654 = vst [vmem:[%s1015_s25 + $0x68] sm:$0xff] %v802_v11  ;;  %v467_v17 = vadd.f32 %v466_v15, %v1009_v44  ;;  %v507_v18 = vadd.f32 %v506_v16, %v328_v9  ;;  %v468_v19 = vpop.f32.mrb[14].mxu0  ;;  %v508_v20 = vpop.f32.mrb[14].mxu1 }
 0x10a   : > { %v525_v21 = vmax.f32 %v465_v14, 0.0  ;;  %v541_v22 = vmax.f32 %v505_v41, 0.0  ;;  %v469_v23 = vadd.f32 %v468_v19, %v1007_v43  ;;  %v509_v24 = vadd.f32 %v508_v20, %v333_v8  ;;  %v470_v25 = vpop.f32.mrb[15].mxu0  ;;  %v510_v26 = vpop.f32.mrb[15].mxu1 }
 0x10b   : > { %v526_v27 = vmax.f32 %v467_v17, 0.0  ;;  %v542_v28 = vmax.f32 %v507_v18, 0.0  ;;  %v471_v29 = vadd.f32 %v470_v25, %v1007_v43  ;;  %v511_v30 = vadd.f32 %v510_v26, %v333_v8 }
 0x10c   : > { %v527_v44 = vmax.f32 %v469_v23, 0.0  ;;  %v543_v31 = vmax.f32 %v509_v24, 0.0 }
 0x10d   : > { %v795_v32 = vpack.c.bf16 %v526_v27, %v525_v21  ;;  %v803_v33 = vpack.c.bf16 %v542_v28, %v541_v22  ;;  %v528_v34 = vmax.f32 %v471_v29, 0.0  ;;  %v544_v35 = vmax.f32 %v511_v30, 0.0 }
 0x10f   : > { %647 = vst [vmem:[%s1015_s25 + $0x30] sm:$0xff] %v795_v32  ;;  %655 = vst [vmem:[%s1015_s25 + $0x70] sm:$0xff] %v803_v33  ;;  %v796_v36 = vpack.c.bf16 %v528_v34, %v527_v44  ;;  %v804_v37 = vpack.c.bf16 %v544_v35, %v543_v31 }
 0x111   : > { %648 = vst [vmem:[%s1015_s25 + $0x38] sm:$0xff] %v796_v36  ;;  %656 = vst [vmem:[%s1015_s25 + $0x78] sm:$0xff] %v804_v37 }
 0x112 PF: > { %s13_s14 = sadd.s32 1, %s866_s14   ;;  %s1054_s12 = smov %s862_s13 }
 0x113   : > { %p10_p5 = scmp.ge.s32.totalorder %s13_s14, 4   ;;  %s1055_s13 = smov %s1057_s15 }
 0x115   :  { %12 = sbr.rel (!%p10_p5) target bundleno = 2 (0x2), region = 62 }

</bundles_post_ra>
